<compile_context>
chip_gen: v6e
topology: v6e:2x2x1
jax: 0.10.0
libtpu: 0.0.40
codegen_flags: <defaults>
</compile_context>

<pallas_src>
import jax
import jax.numpy as jnp
from jax.experimental import pallas as pl
from jax.experimental.pallas import tpu as pltpu

DATA_DIM = 2
HIDDEN = 16
OUT = 1

LANE = 128
P_COLS = DATA_DIM + 3            # packed params: [w1^T (2 cols) | b1 | w2 | b2]
_C_B1 = DATA_DIM
_C_W2 = DATA_DIM + 1
_C_B2 = DATA_DIM + 2


def _round_up(x, m):
    return (x + m - 1) // m * m


def _pick_tile_b():
    # Lane-tile sized to amortize ~0.35us fixed per-grid-step overhead against each
    # generation's HBM bandwidth; VMEM footprint is ~24 bytes/lane double-buffered.
    try:
        kind = jax.devices()[0].device_kind.lower()
    except Exception:
        return 131072
    if "v5" in kind:
        return 65536          # ~0.82 TB/s HBM
    if "v7" in kind:
        return 262144         # ~3.2 TB/s HBM; ~6 MiB VMEM, far under the 32 MiB default
    return 131072             # v6e-class, ~1.3-1.4 TB/s


TILE_B = _pick_tile_b()


def disc_kernel(x_ref, p_ref, o_ref):
    # x_ref : (DATA_DIM, TB)   transposed input tile (batch on the 128-lane axis)
    # p_ref : (HIDDEN, P_COLS) packed resident params [w1^T | b1 | w2 | b2]
    # o_ref : (OUT, TB)        lane-dense output tile
    p = p_ref[...]
    w1 = p[:, :DATA_DIM]                       # (16, 2)
    b1 = p[:, _C_B1:_C_B1 + 1]                 # (16, 1)
    w2 = p[:, _C_W2:_C_W2 + 1]                 # (16, 1)
    b2 = p[0:1, _C_B2:_C_B2 + 1]               # (1, 1)

    # Layer 1 on the MXU: (16, 2) @ (2, TB) -> (16, TB), then bias + ReLU on the VPU.
    h = jnp.dot(w1, x_ref[...], preferred_element_type=jnp.float32)
    h = jnp.maximum(h + b1, 0.0)

    # Layer 2 (16 -> 1) as a sublane (XLU) reduction instead of an M=1 MXU matmul.
    z = jnp.sum(h * w2, axis=0, keepdims=True) + b2

    # Exact sigmoid: exp on the EUP, f32 divide.  (pl.reciprocal(approx=True) is an
    # option but the kernel is HBM-bound, so it buys nothing and costs precision.)
    o_ref[...] = 1.0 / (1.0 + jnp.exp(-z))


def _tiles(batch):
    """Pick (tile_lanes, padded_batch) for a given batch size (static Python ints)."""
    bp_min = _round_up(max(batch, 1), LANE)
    if bp_min <= LANE:
        tb = bp_min                                   # tiny batch: one minimal tile
    elif bp_min <= TILE_B:
        tb = _round_up(pl.cdiv(bp_min, 2), LANE)      # >=2 steps so both v7x TCs work
    else:
        tb = TILE_B
    return tb, _round_up(bp_min, tb)


@jax.jit
def discriminator_forward_t(x_t, packed_params):
    """Primary path. x_t: (DATA_DIM, B) feature-major input -> (B, OUT)."""
    _, B = x_t.shape
    tb, bp = _tiles(B)

    x_p = x_t.astype(jnp.float32)
    if bp != B:  # zero batch-padding is inert; padded columns are sliced away below
        x_p = jnp.pad(x_p, ((0, 0), (0, bp - B)))

    out = pl.pallas_call(
        disc_kernel,
        out_shape=jax.ShapeDtypeStruct((OUT, bp), jnp.float32),
        grid=(bp // tb,),
        in_specs=[
            pl.BlockSpec((DATA_DIM, tb), lambda i: (0, i)),     # input walks the batch
            pl.BlockSpec((HIDDEN, P_COLS), lambda i: (0, 0)),   # params stay resident
        ],
        out_specs=pl.BlockSpec((OUT, tb), lambda i: (0, i)),    # lane-dense output row
        compiler_params=pltpu.CompilerParams(
            dimension_semantics=("parallel",)),                 # megacore on v7x
        cost_estimate=pl.CostEstimate(
            flops=2 * bp * (DATA_DIM * HIDDEN + HIDDEN * OUT),
            transcendentals=bp,
            bytes_accessed=(DATA_DIM + OUT) * bp * 4 + HIDDEN * P_COLS * 4,
        ),
    )(x_p, packed_params)

    return out[0, :B].reshape(B, OUT)


@jax.jit
def discriminator_forward(data, packed_params):
    """Fallback path. data: (B, DATA_DIM) sample-major, matching the PyTorch module.

    The cast+transpose fuses with the pallas_call producer inside this jit; prefer
    discriminator_forward_t with feature-major activations to avoid the extra pass.
    """
    return discriminator_forward_t(data.astype(jnp.float32).T, packed_params)


def prepare_params(w1, b1, w2, b2):
    """Pack all parameters ONCE into a single resident (HIDDEN, P_COLS) array."""
    w1 = jnp.asarray(w1, jnp.float32)                 # (DATA_DIM, HIDDEN)
    b1 = jnp.asarray(b1, jnp.float32).reshape(HIDDEN)
    w2 = jnp.asarray(w2, jnp.float32).reshape(HIDDEN)
    b2 = jnp.asarray(b2, jnp.float32).reshape(())
    p = jnp.zeros((HIDDEN, P_COLS), jnp.float32)
    p = p.at[:, :DATA_DIM].set(w1.T)
    p = p.at[:, _C_B1].set(b1)
    p = p.at[:, _C_W2].set(w2)
    p = p.at[0, _C_B2].set(b2)
    return p


def init_params(key):
    # Mimics PyTorch's default Linear init: uniform +/- 1/sqrt(fan_in).
    k1, k2, k3, k4 = jax.random.split(key, 4)
    lim1 = 1.0 / jnp.sqrt(DATA_DIM)
    lim2 = 1.0 / jnp.sqrt(HIDDEN)
    w1 = jax.random.uniform(k1, (DATA_DIM, HIDDEN), jnp.float32, -lim1, lim1)
    b1 = jax.random.uniform(k2, (HIDDEN,), jnp.float32, -lim1, lim1)
    w2 = jax.random.uniform(k3, (HIDDEN, OUT), jnp.float32, -lim2, lim2)
    b2 = jax.random.uniform(k4, (OUT,), jnp.float32, -lim2, lim2)
    return w1, b1, w2, b2


if __name__ == "__main__":
    key = jax.random.PRNGKey(0)
    kp, kx, kx2 = jax.random.split(key, 3)
    w1, b1, w2, b2 = init_params(kp)
    packed = prepare_params(w1, b1, w2, b2)

    def reference(d):
        return jax.nn.sigmoid(jnp.maximum(d @ w1 + b1, 0.0) @ w2 + b2)

    # Tolerance covers MXU default-precision passes for f32 in either implementation.
    TOL = 2e-3

    # Small smoke test via the sample-major fallback wrapper (single grid step).
    B = 8
    data = jax.random.normal(kx, (B, DATA_DIM), jnp.float32)
    out = jax.block_until_ready(discriminator_forward(data, packed))
    assert out.shape == (B, OUT)
    assert jnp.allclose(out, reference(data), atol=TOL, rtol=TOL)

    # Primary feature-major path; exercises grid > 1 (2 tiles) with resident params,
    # batch padding and output slicing.
    B2 = 300
    data2 = jax.random.normal(kx2, (B2, DATA_DIM), jnp.float32)
    out2 = jax.block_until_ready(discriminator_forward_t(data2.T, packed))
    assert out2.shape == (B2, OUT)
    assert jnp.allclose(out2, reference(data2), atol=TOL, rtol=TOL)

    print("KERNEL_OK")
</pallas_src>

<mosaic_0001>
module attributes {stable_mosaic.version = 11 : i64} {
  func.func @disc_kernel(%arg0: i32, %arg1: memref<2x128xf32, #tpu.memory_space<vmem>>, %arg2: memref<16x5xf32, #tpu.memory_space<vmem>>, %arg3: memref<1x128xf32, #tpu.memory_space<vmem>>) attributes {dimension_semantics = [#tpu.dimension_semantics<parallel>], iteration_bounds = array<i64: 1>, scalar_prefetch = 0 : i64, scratch_operands = 0 : i64, tpu.core_type = #tpu.core_type<tc>, window_params = [{transform_indices = @transform_0, window_bounds = array<i64: 2, 128>}, {pipeline_mode = #tpu.pipeline_mode<synchronous>, transform_indices = @transform_1, window_bounds = array<i64: 16, 5>}, {transform_indices = @transform_2, window_bounds = array<i64: 1, 128>}]} {
    %c0 = arith.constant 0 : index
    %c0_0 = arith.constant 0 : index
    %0 = vector.load %arg2[%c0, %c0_0] : memref<16x5xf32, #tpu.memory_space<vmem>>, vector<16x5xf32>
    %1 = vector.extract_strided_slice %0 {offsets = [0, 0], sizes = [16, 2], strides = [1, 1]} : vector<16x5xf32> to vector<16x2xf32>
    %2 = vector.extract_strided_slice %0 {offsets = [0, 2], sizes = [16, 1], strides = [1, 1]} : vector<16x5xf32> to vector<16x1xf32>
    %3 = vector.extract_strided_slice %0 {offsets = [0, 3], sizes = [16, 1], strides = [1, 1]} : vector<16x5xf32> to vector<16x1xf32>
    %4 = vector.extract_strided_slice %0 {offsets = [0, 4], sizes = [1, 1], strides = [1, 1]} : vector<16x5xf32> to vector<1x1xf32>
    %c0_1 = arith.constant 0 : index
    %c0_2 = arith.constant 0 : index
    %5 = vector.load %arg1[%c0_1, %c0_2] : memref<2x128xf32, #tpu.memory_space<vmem>>, vector<2x128xf32>
    %cst = arith.constant dense<0.000000e+00> : vector<16x128xf32>
    %6 = tpu.matmul %1, %5, %cst {dimension_numbers = #tpu.dot_dimension_numbers<[1], [0], [0], [1], [0, 0, 1, 1], [], []>} : vector<16x2xf32>, vector<2x128xf32>, vector<16x128xf32> -> vector<16x128xf32>
    %7 = vector.broadcast %2 : vector<16x1xf32> to vector<16x128xf32>
    %8 = arith.addf %6, %7 : vector<16x128xf32>
    %cst_3 = arith.constant 0.000000e+00 : f32
    %9 = vector.broadcast %cst_3 : f32 to vector<16x128xf32>
    %10 = arith.maximumf %8, %9 : vector<16x128xf32>
    %11 = vector.broadcast %3 : vector<16x1xf32> to vector<16x128xf32>
    %12 = arith.mulf %10, %11 : vector<16x128xf32>
    %cst_4 = arith.constant dense<0.000000e+00> : vector<128xf32>
    %13 = vector.multi_reduction <add>, %12, %cst_4 [0] : vector<16x128xf32> to vector<128xf32>
    %14 = vector.shape_cast %13 : vector<128xf32> to vector<1x128xf32>
    %15 = vector.broadcast %4 : vector<1x1xf32> to vector<1x128xf32>
    %16 = arith.addf %14, %15 : vector<1x128xf32>
    %cst_5 = arith.constant 0.000000e+00 : f32
    %17 = vector.broadcast %cst_5 : f32 to vector<1x128xf32>
    %18 = arith.subf %17, %16 : vector<1x128xf32>
    %19 = math.exp %18 : vector<1x128xf32>
    %cst_6 = arith.constant 1.000000e+00 : f32
    %20 = vector.broadcast %cst_6 : f32 to vector<1x128xf32>
    %21 = arith.addf %20, %19 : vector<1x128xf32>
    %cst_7 = arith.constant 1.000000e+00 : f32
    %22 = vector.broadcast %cst_7 : f32 to vector<1x128xf32>
    %23 = arith.divf %22, %21 : vector<1x128xf32>
    %c0_8 = arith.constant 0 : index
    %c0_9 = arith.constant 0 : index
    %24 = vector.load %arg3[%c0_8, %c0_9] : memref<1x128xf32, #tpu.memory_space<vmem>>, vector<1x128xf32>
    tpu.vector_store %arg3[%c0_8, %c0_9], %23 {strides = array<i32>} : memref<1x128xf32, #tpu.memory_space<vmem>>, vector<1x128xf32>,
    return
  }
  func.func @transform_0(%arg0: i32) -> (i32, i32) {
    %c0_i32 = arith.constant 0 : i32
    %c0_i32_0 = arith.constant 0 : i32
    return %c0_i32, %arg0 : i32, i32
  }
  func.func @transform_1(%arg0: i32) -> (i32, i32) {
    %c0_i32 = arith.constant 0 : i32
    %c0_i32_0 = arith.constant 0 : i32
    %c0_i32_1 = arith.constant 0 : i32
    return %c0_i32, %c0_i32_0 : i32, i32
  }
  func.func @transform_2(%arg0: i32) -> (i32, i32) {
    %c0_i32 = arith.constant 0 : i32
    %c0_i32_0 = arith.constant 0 : i32
    return %c0_i32, %arg0 : i32, i32
  }
}

</mosaic_0001>

<bundles_post_ra>
// kernel: discriminator_forward_t.1
= control target key start
LH: loop header
LB: loop body
LE: loop exit
PB: predicated region body
PF: predicated region fallthrough
CT: control target
= control target key end

     0   :  { %vm29_vm0 = vcmask 1041408   ;;  %vm24_vm1 = vcmask 15360   ;;  %v164_v3 = vmov 2   ;;  %v165_v4 = vmov 3   ;;  %s194_s0 = inlined_call_operand.vmem [shape: f32[2,128], index: 0, kind: input, shape index: {}]   ;;  %s195_s1 = inlined_call_operand.vmem [shape: f32[16,5], index: 1, kind: input, shape index: {}]   ;;  %s196_s2 = inlined_call_operand.vmem [shape: f32[1,128], index: 2, kind: output, shape index: {}]  }
   0x1   :  { %v13_v0 = vld [vmem:[%s194_s0] sm:$0x3]  ;;  %v12_v2 = vld [vmem:[%s195_s1 + $0x8] sm:$0xff]  ;;  %157 = vset.pattern.permute.xlu0 %v164_v3  ;;  %158 = vset.pattern.permute.xlu1 %v165_v4  ;;  %v166_v5 = vmov 4  }
   0x2   :  { %v11_v1 = vld [vmem:[%s195_s1] sm:$0xff]  ;;  %149 = vmatprep.subr.msk.mxu0 %vm29_vm0, %v13_v0 }
   0x3   :  { %151 = vmatprep.mubr.msk.f32.mxu0 %vm24_vm1, %v11_v1  ;;  %150 = vmatpush3.msk.msra.mxu0 %vm29_vm0, %v13_v0 }
   0x4   :  { %16 = vperm.xlu0 %157, %v11_v1   ;;  %152 = vmatmul.mubr.msk.f32.vlgmr.msra.gmra.mxu0 %vm24_vm1, %v12_v2 }
   0x5   :  { %111 = vperm.xlu1 %158, %v11_v1  }
   0x8   :  { %21 = vperm.xlu0 %157, %v12_v2  }
   0x9   :  { %115 = vperm.xlu1 %158, %v12_v2  }
   0xc   :  { %159 = vset.pattern.permute.xlu0 %v166_v5 }
   0xd   :  { %128 = vperm.xlu0 %159, %v11_v1  }
  0x7f   :  { %v17_v6 = vpop.permute.xlu0 %16 }
  0x80   :  { %v112_v7 = vpop.permute.xlu1 %111 }
  0x83   :  { %v22_v8 = vpop.permute.xlu0 %21 }
  0x84   :  { %v116_v15 = vpop.permute.xlu1 %115 }
  0x88   :  { %v129_v24 = vpop.permute.xlu0 %128 }
  0xc4   :  { %v153_v9 = vpop.f32.mrf.mxu0 }
  0xc5   :  { %v105_v10 = vadd.f32 %v153_v9, %v22_v8 }
  0xc6   :  { %v99_v11 = vpop.f32.mrf.mxu0 }
  0xc7   :  { %v109_v12 = vmax.f32 %v105_v10, 0.0  ;;  %v100_v13 = vadd.f32 %v99_v11, %v17_v6 }
  0xc9   :  { %v108_v14 = vmax.f32 %v100_v13, 0.0  ;;  %v119_v16 = vmul.f32 %v116_v15, %v109_v12 }
  0xcb   :  { %v118_v17 = vmul.f32 %v112_v7, %v108_v14 }
  0xcd   :  { %v120_v18 = vadd.f32 %v119_v16, %v118_v17 }
  0xcf   :  { %v121_v19 = vrot.slane %v120_v18, 4 }
  0xd1   :  { %v122_v20 = vadd.f32 %v121_v19, %v120_v18 }
  0xd3   :  { %v123_v21 = vrot.slane %v122_v20, 2 }
  0xd5   :  { %v124_v22 = vadd.f32 %v123_v21, %v122_v20 }
  0xd7   :  { %v125_v23 = vrot.slane %v124_v22, 1 }
  0xd9   :  { %v126_v25 = vadd.f32 %v125_v23, %v124_v22 }
  0xdb   :  { %v131_v26 = vadd.f32 %v129_v24, %v126_v25 }
  0xdd   :  { %v132_v27 = vsub.f32 0.0, %v131_v26 }
  0xdf   :  { %v133_v28 = vmul.f32 1.442695, %v132_v27 }
  0xe1   :  { %160 = vpow2.f32 %v133_v28 }
  0xee   :  { %v161_v29 = vpop.eup %160 }
  0xef   :  { %v135_v30 = vadd.f32 1.0, %v161_v29 }
  0xf1   :  { %162 = vrcp.f32 %v135_v30 }
  0xfe   :  { %v163_v31 = vpop.eup %162 }
  0xff   :  { %138 = vst [vmem:[%s196_s2] sm:$0x1] %v163_v31 }

</bundles_post_ra>
